<compile_context>
chip_gen: v5e
topology: v5e:2x2
jax: 0.10.0
libtpu: 0.0.40
codegen_flags: <defaults>
</compile_context>

<pallas_src>
import jax
import jax.numpy as jnp
from jax import lax
from jax.experimental import pallas as pl
from jax.experimental.pallas import tpu as pltpu


def _mlp_kernel(x_ref,
                w0_ref, b0_ref,
                w1_ref, b1_ref,
                w2_ref, b2_ref,
                w3_ref, b3_ref,
                o_ref):
    # x tile: (tb, in_dim).  Cast on the VPU (no-op for f32 callers; lets a
    # bf16 caller halve the streamed HBM traffic without a wrapper pass).
    x = x_ref[...].astype(jnp.float32)

    # Layer 0: h0^T = W0 @ x^T, expressed as an A.B^T contraction (contract
    # both operands on their last dim) so no explicit transpose of the x tile
    # is needed.  Result (L0, tb): batch on lanes, fully lane-dense.
    # (Dropout(D0) == identity in eval.)
    h = lax.dot_general(w0_ref[...], x, (((1,), (1,)), ((), ())),
                        preferred_element_type=jnp.float32)          # (L0, tb)
    h = jnp.maximum(h + b0_ref[...], 0.0)

    # Layer 1: canonical W @ h^T matmul.  (Dropout(D1) == identity in eval.)
    h = jnp.dot(w1_ref[...], h, preferred_element_type=jnp.float32)  # (L1, tb)
    h = jnp.maximum(h + b1_ref[...], 0.0)

    # Layer 2.  (Dropout(D2) == identity in eval.)
    h = jnp.dot(w2_ref[...], h, preferred_element_type=jnp.float32)  # (L2, tb)
    h = jnp.maximum(h + b2_ref[...], 0.0)

    # Output layer (no activation).  (out_dim, tb) -> lane-dense, unmasked
    # stores; written exactly once per grid step.
    out = jnp.dot(w3_ref[...], h, preferred_element_type=jnp.float32)
    o_ref[...] = (out + b3_ref[...]).astype(o_ref.dtype)


def frame_nn_student_forward(x, params, *, tb=2048):
    """x: [B, in_dim] float32 (bf16 also accepted).  params: see init_params.

    Returns [B, out_dim] float32.
    """
    B, in_dim = x.shape
    out_dim = params["w3"].shape[0]
    L0 = params["w0"].shape[0]
    L1 = params["w1"].shape[0]
    L2 = params["w2"].shape[0]

    # ---- batch-tile selection -------------------------------------------
    # Tiles are multiples of 128 (lane-dense output blocks).  Keep >= 2 grid
    # steps (rounded towards an even count) whenever B > 128 so the
    # ("parallel",) batch axis actually uses both TensorCores on v7x.
    tb_cap = (min(max(int(tb), 128), 4096) // 128) * 128
    if B <= 128:
        tb_eff, num_tiles = B, 1          # single full-array block (always legal)
    else:
        num_tiles = max(2, pl.cdiv(B, tb_cap))
        num_tiles += num_tiles % 2        # prefer an even step count (v7x)
        tb_eff = ((pl.cdiv(B, num_tiles) + 127) // 128) * 128
        num_tiles = pl.cdiv(B, tb_eff)    # Pallas masks the partial last block

    # Weights in native nn.Linear layout [out_features, in_features]; biases
    # reshaped to (L, 1) columns so they lane-broadcast over the batch axis.
    w = [params[f"w{i}"] for i in range(4)]
    b = [params[f"b{i}"].reshape(-1, 1) for i in range(4)]

    # Constant index_map -> fetched once, VMEM-resident across all grid steps.
    resident = lambda a: pl.BlockSpec(a.shape, lambda i: (0, 0))

    flops = 2 * B * (in_dim * L0 + L0 * L1 + L1 * L2 + L2 * out_dim)
    param_bytes = sum(int(a.size) * a.dtype.itemsize for a in w + b)
    bytes_accessed = (B * in_dim * x.dtype.itemsize          # streamed x
                      + B * out_dim * 4                      # streamed out^T
                      + param_bytes)                         # resident params
    cost = pl.CostEstimate(flops=int(flops), transcendentals=0,
                           bytes_accessed=int(bytes_accessed))

    out_t = pl.pallas_call(
        _mlp_kernel,
        out_shape=jax.ShapeDtypeStruct((out_dim, B), jnp.float32),
        grid=(num_tiles,),
        in_specs=[
            pl.BlockSpec((tb_eff, in_dim), lambda i: (i, 0)),   # x: streamed
            resident(w[0]), resident(b[0]),
            resident(w[1]), resident(b[1]),
            resident(w[2]), resident(b[2]),
            resident(w[3]), resident(b[3]),
        ],
        out_specs=pl.BlockSpec((out_dim, tb_eff), lambda i: (0, i)),
        compiler_params=pltpu.CompilerParams(
            dimension_semantics=("parallel",),
            vmem_limit_bytes=32 * 1024 * 1024),
        cost_estimate=cost,
    )(x, w[0], b[0], w[1], b[1], w[2], b[2], w[3], b[3])

    # Tiny relayout back to the module's [B, out_dim] convention (the kernel
    # emits the lane-dense transpose; this moves ~32 B/row, fuses downstream).
    return out_t.T


def init_params(key, in_dim, L0, L1, L2, out_dim):
    """PyTorch nn.Linear-style init: U(-1/sqrt(fan_in), 1/sqrt(fan_in)).
    Weights stored in native nn.Linear layout [out_features, in_features]."""
    dims = [(in_dim, L0), (L0, L1), (L1, L2), (L2, out_dim)]
    params = {}
    for i, (fi, fo) in enumerate(dims):
        key, kw, kb = jax.random.split(key, 3)
        bound = 1.0 / float(fi) ** 0.5
        params[f"w{i}"] = jax.random.uniform(
            kw, (fo, fi), jnp.float32, minval=-bound, maxval=bound)
        params[f"b{i}"] = jax.random.uniform(
            kb, (fo,), jnp.float32, minval=-bound, maxval=bound)
    return params


def reference_forward(x, params):
    """Pure-JAX f32 reference mirroring the PyTorch eval forward."""
    h = x
    for i in range(3):
        h = jnp.maximum(h @ params[f"w{i}"].T + params[f"b{i}"], 0.0)
    return h @ params["w3"].T + params["b3"]


if __name__ == "__main__":
    # Small deterministic problem; B deliberately not a multiple of the batch
    # tile so the masked-last-block path and the 2-step grid are exercised.
    B, in_dim, out_dim = 1000, 32, 8
    L0, L1, L2 = 64, 48, 16  # deterministic picks inside the module's ranges

    key = jax.random.PRNGKey(0)
    key, kx = jax.random.split(key)
    x = jax.random.normal(kx, (B, in_dim), jnp.float32)
    params = init_params(key, in_dim, L0, L1, L2, out_dim)

    out = frame_nn_student_forward(x, params)
    out = jax.block_until_ready(out)

    ref = reference_forward(x, params)
    assert out.shape == (B, out_dim)
    assert bool(jnp.allclose(out, ref, atol=2e-2, rtol=2e-2))

    print("KERNEL_OK")
</pallas_src>

<mosaic_0001>
module attributes {stable_mosaic.version = 11 : i64} {
  func.func @_mlp_kernel(%arg0: i32, %arg1: memref<512x32xf32, #tpu.memory_space<vmem>>, %arg2: memref<64x32xf32, #tpu.memory_space<vmem>>, %arg3: memref<64x1xf32, #tpu.memory_space<vmem>>, %arg4: memref<48x64xf32, #tpu.memory_space<vmem>>, %arg5: memref<48x1xf32, #tpu.memory_space<vmem>>, %arg6: memref<16x48xf32, #tpu.memory_space<vmem>>, %arg7: memref<16x1xf32, #tpu.memory_space<vmem>>, %arg8: memref<8x16xf32, #tpu.memory_space<vmem>>, %arg9: memref<8x1xf32, #tpu.memory_space<vmem>>, %arg10: memref<8x512xf32, #tpu.memory_space<vmem>>) attributes {dimension_semantics = [#tpu.dimension_semantics<parallel>], iteration_bounds = array<i64: 2>, scalar_prefetch = 0 : i64, scratch_operands = 0 : i64, tpu.core_type = #tpu.core_type<tc>, window_params = [{transform_indices = @transform_0, window_bounds = array<i64: 512, 32>}, {pipeline_mode = #tpu.pipeline_mode<synchronous>, transform_indices = @transform_1, window_bounds = array<i64: 64, 32>}, {pipeline_mode = #tpu.pipeline_mode<synchronous>, transform_indices = @transform_2, window_bounds = array<i64: 64, 1>}, {pipeline_mode = #tpu.pipeline_mode<synchronous>, transform_indices = @transform_3, window_bounds = array<i64: 48, 64>}, {pipeline_mode = #tpu.pipeline_mode<synchronous>, transform_indices = @transform_4, window_bounds = array<i64: 48, 1>}, {pipeline_mode = #tpu.pipeline_mode<synchronous>, transform_indices = @transform_5, window_bounds = array<i64: 16, 48>}, {pipeline_mode = #tpu.pipeline_mode<synchronous>, transform_indices = @transform_6, window_bounds = array<i64: 16, 1>}, {pipeline_mode = #tpu.pipeline_mode<synchronous>, transform_indices = @transform_7, window_bounds = array<i64: 8, 16>}, {pipeline_mode = #tpu.pipeline_mode<synchronous>, transform_indices = @transform_8, window_bounds = array<i64: 8, 1>}, {transform_indices = @transform_9, window_bounds = array<i64: 8, 512>}]} {
    %c0 = arith.constant 0 : index
    %c0_0 = arith.constant 0 : index
    %0 = vector.load %arg1[%c0, %c0_0] : memref<512x32xf32, #tpu.memory_space<vmem>>, vector<512x32xf32>
    %c0_1 = arith.constant 0 : index
    %c0_2 = arith.constant 0 : index
    %1 = vector.load %arg2[%c0_1, %c0_2] : memref<64x32xf32, #tpu.memory_space<vmem>>, vector<64x32xf32>
    %cst = arith.constant dense<0.000000e+00> : vector<64x512xf32>
    %2 = tpu.matmul %1, %0, %cst {dimension_numbers = #tpu.dot_dimension_numbers<[1], [1], [0], [0], [0, 0, 1, 0], [], []>} : vector<64x32xf32>, vector<512x32xf32>, vector<64x512xf32> -> vector<64x512xf32>
    %c0_3 = arith.constant 0 : index
    %c0_4 = arith.constant 0 : index
    %3 = vector.load %arg3[%c0_3, %c0_4] : memref<64x1xf32, #tpu.memory_space<vmem>>, vector<64x1xf32>
    %4 = vector.broadcast %3 : vector<64x1xf32> to vector<64x512xf32>
    %5 = arith.addf %2, %4 : vector<64x512xf32>
    %cst_5 = arith.constant 0.000000e+00 : f32
    %6 = vector.broadcast %cst_5 : f32 to vector<64x512xf32>
    %7 = arith.maximumf %5, %6 : vector<64x512xf32>
    %c0_6 = arith.constant 0 : index
    %c0_7 = arith.constant 0 : index
    %8 = vector.load %arg4[%c0_6, %c0_7] : memref<48x64xf32, #tpu.memory_space<vmem>>, vector<48x64xf32>
    %cst_8 = arith.constant dense<0.000000e+00> : vector<48x512xf32>
    %9 = tpu.matmul %8, %7, %cst_8 {dimension_numbers = #tpu.dot_dimension_numbers<[1], [0], [0], [1], [0, 0, 1, 1], [], []>} : vector<48x64xf32>, vector<64x512xf32>, vector<48x512xf32> -> vector<48x512xf32>
    %c0_9 = arith.constant 0 : index
    %c0_10 = arith.constant 0 : index
    %10 = vector.load %arg5[%c0_9, %c0_10] : memref<48x1xf32, #tpu.memory_space<vmem>>, vector<48x1xf32>
    %11 = vector.broadcast %10 : vector<48x1xf32> to vector<48x512xf32>
    %12 = arith.addf %9, %11 : vector<48x512xf32>
    %cst_11 = arith.constant 0.000000e+00 : f32
    %13 = vector.broadcast %cst_11 : f32 to vector<48x512xf32>
    %14 = arith.maximumf %12, %13 : vector<48x512xf32>
    %c0_12 = arith.constant 0 : index
    %c0_13 = arith.constant 0 : index
    %15 = vector.load %arg6[%c0_12, %c0_13] : memref<16x48xf32, #tpu.memory_space<vmem>>, vector<16x48xf32>
    %cst_14 = arith.constant dense<0.000000e+00> : vector<16x512xf32>
    %16 = tpu.matmul %15, %14, %cst_14 {dimension_numbers = #tpu.dot_dimension_numbers<[1], [0], [0], [1], [0, 0, 1, 1], [], []>} : vector<16x48xf32>, vector<48x512xf32>, vector<16x512xf32> -> vector<16x512xf32>
    %c0_15 = arith.constant 0 : index
    %c0_16 = arith.constant 0 : index
    %17 = vector.load %arg7[%c0_15, %c0_16] : memref<16x1xf32, #tpu.memory_space<vmem>>, vector<16x1xf32>
    %18 = vector.broadcast %17 : vector<16x1xf32> to vector<16x512xf32>
    %19 = arith.addf %16, %18 : vector<16x512xf32>
    %cst_17 = arith.constant 0.000000e+00 : f32
    %20 = vector.broadcast %cst_17 : f32 to vector<16x512xf32>
    %21 = arith.maximumf %19, %20 : vector<16x512xf32>
    %c0_18 = arith.constant 0 : index
    %c0_19 = arith.constant 0 : index
    %22 = vector.load %arg8[%c0_18, %c0_19] : memref<8x16xf32, #tpu.memory_space<vmem>>, vector<8x16xf32>
    %cst_20 = arith.constant dense<0.000000e+00> : vector<8x512xf32>
    %23 = tpu.matmul %22, %21, %cst_20 {dimension_numbers = #tpu.dot_dimension_numbers<[1], [0], [0], [1], [0, 0, 1, 1], [], []>} : vector<8x16xf32>, vector<16x512xf32>, vector<8x512xf32> -> vector<8x512xf32>
    %c0_21 = arith.constant 0 : index
    %c0_22 = arith.constant 0 : index
    %24 = vector.load %arg9[%c0_21, %c0_22] : memref<8x1xf32, #tpu.memory_space<vmem>>, vector<8x1xf32>
    %25 = vector.broadcast %24 : vector<8x1xf32> to vector<8x512xf32>
    %26 = arith.addf %23, %25 : vector<8x512xf32>
    %c0_23 = arith.constant 0 : index
    %c0_24 = arith.constant 0 : index
    %27 = vector.load %arg10[%c0_23, %c0_24] : memref<8x512xf32, #tpu.memory_space<vmem>>, vector<8x512xf32>
    tpu.vector_store %arg10[%c0_23, %c0_24], %26 {strides = array<i32>} : memref<8x512xf32, #tpu.memory_space<vmem>>, vector<8x512xf32>,
    return
  }
  func.func @transform_0(%arg0: i32) -> (i32, i32) {
    %c0_i32 = arith.constant 0 : i32
    %c0_i32_0 = arith.constant 0 : i32
    return %arg0, %c0_i32 : i32, i32
  }
  func.func @transform_1(%arg0: i32) -> (i32, i32) {
    %c0_i32 = arith.constant 0 : i32
    %c0_i32_0 = arith.constant 0 : i32
    %c0_i32_1 = arith.constant 0 : i32
    return %c0_i32, %c0_i32_0 : i32, i32
  }
  func.func @transform_2(%arg0: i32) -> (i32, i32) {
    %c0_i32 = arith.constant 0 : i32
    %c0_i32_0 = arith.constant 0 : i32
    %c0_i32_1 = arith.constant 0 : i32
    return %c0_i32, %c0_i32_0 : i32, i32
  }
  func.func @transform_3(%arg0: i32) -> (i32, i32) {
    %c0_i32 = arith.constant 0 : i32
    %c0_i32_0 = arith.constant 0 : i32
    %c0_i32_1 = arith.constant 0 : i32
    return %c0_i32, %c0_i32_0 : i32, i32
  }
  func.func @transform_4(%arg0: i32) -> (i32, i32) {
    %c0_i32 = arith.constant 0 : i32
    %c0_i32_0 = arith.constant 0 : i32
    %c0_i32_1 = arith.constant 0 : i32
    return %c0_i32, %c0_i32_0 : i32, i32
  }
  func.func @transform_5(%arg0: i32) -> (i32, i32) {
    %c0_i32 = arith.constant 0 : i32
    %c0_i32_0 = arith.constant 0 : i32
    %c0_i32_1 = arith.constant 0 : i32
    return %c0_i32, %c0_i32_0 : i32, i32
  }
  func.func @transform_6(%arg0: i32) -> (i32, i32) {
    %c0_i32 = arith.constant 0 : i32
    %c0_i32_0 = arith.constant 0 : i32
    %c0_i32_1 = arith.constant 0 : i32
    return %c0_i32, %c0_i32_0 : i32, i32
  }
  func.func @transform_7(%arg0: i32) -> (i32, i32) {
    %c0_i32 = arith.constant 0 : i32
    %c0_i32_0 = arith.constant 0 : i32
    %c0_i32_1 = arith.constant 0 : i32
    return %c0_i32, %c0_i32_0 : i32, i32
  }
  func.func @transform_8(%arg0: i32) -> (i32, i32) {
    %c0_i32 = arith.constant 0 : i32
    %c0_i32_0 = arith.constant 0 : i32
    %c0_i32_1 = arith.constant 0 : i32
    return %c0_i32, %c0_i32_0 : i32, i32
  }
  func.func @transform_9(%arg0: i32) -> (i32, i32) {
    %c0_i32 = arith.constant 0 : i32
    %c0_i32_0 = arith.constant 0 : i32
    return %c0_i32, %arg0 : i32, i32
  }
}

</mosaic_0001>

<bundles_post_ra>
// kernel: tpu_custom_call.1
= control target key start
LH: loop header
LB: loop body
LE: loop exit
PB: predicated region body
PF: predicated region fallthrough
CT: control target
= control target key end

     0   :  { %14 = vsyncpa [#allocation3], 0  ;;  %s2151_s0 = inlined_call_operand.vmem [shape: f32[1000,32], index: 0, kind: input, shape index: {}]   ;;  %s2152_s1 = inlined_call_operand.vmem [shape: f32[64,32], index: 1, kind: input, shape index: {}]   ;;  %s2153_s2 = inlined_call_operand.vmem [shape: f32[64,1], index: 2, kind: input, shape index: {}]   ;;  %s2154_s3 = inlined_call_operand.vmem [shape: f32[48,64], index: 3, kind: input, shape index: {}]   ;;  %s2155_s4 = inlined_call_operand.vmem [shape: f32[48,1], index: 4, kind: input, shape index: {}]   ;;  %s2156_s5 = inlined_call_operand.vmem [shape: f32[16,48], index: 5, kind: input, shape index: {}]   ;;  %s2157_s6 = inlined_call_operand.vmem [shape: f32[16,1], index: 6, kind: input, shape index: {}]   ;;  %s2158_s7 = inlined_call_operand.vmem [shape: f32[8,16], index: 7, kind: input, shape index: {}]   ;;  %s2159_s8 = inlined_call_operand.vmem [shape: f32[8,1], index: 8, kind: input, shape index: {}]   ;;  %s2160_s9 = inlined_call_operand.hbm [shape: f32[8,1000], index: 9, kind: output, shape index: {}]  }
   0x1   :  { %16 = vsyncpa [#allocation3 + $0x1], 0  ;;  %s1707_s30 = smov 0   ;;  %s1709_s10 = smov 0  }
   0x2   :  { %s1711_s11 = smov 0   ;;  %s1713_s12 = smov 0  }
   0x3 LB: > { %s1728_s13 = sadd.s32 4294967295, %s1654_s12   ;;  %s1404_s14 = sadd.s32 4294967294, %s1654_s12   ;;  %s1654_s12 = sphi %s1713_s12, %s2166_s12   ;;  %s1650_s11 = sphi %s1711_s11, %s2165_s11   ;;  %s1646_s10 = sphi %s1709_s10, %s2164_s10   ;;  %s1642_s30 = sphi %s1707_s30, %s2163_s30  }
   0x4   : > { %s1732_s15 = sadd.s32 1, %s1654_s12   ;;  %s223_s16 = sadd.s32 1, %s1650_s11 }
   0x5   : > { %s220_s17 = ssub.s32 %s1654_s12, %s1732_s15  ;;  %p233_p0 = scmp.ne.s32.totalorder %s1650_s11, %s1646_s10 }
   0x6   : > { %p221_p1 = scmp.eq.s32.totalorder %s220_s17, 0  ;;  %p234_p2 = scmp.eq.s32.totalorder %s1728_s13, 1 }
   0x7   : > { %p239_p3 = scmp.ne.s32.totalorder %s1646_s10, %s1642_s30  ;;  %p240_p4 = scmp.eq.s32.totalorder %s1404_s14, 1 }
   0x8   : > { %s1743_s18 = scalar_select %p221_p1, %s1650_s11, %s223_s16  }
   0x9   : > { %p1745_p5 = por %p234_p2, %p233_p0  ;;  %p1749_p6 = por %p240_p4, %p239_p3 }
   0xa   : > { %p1407_p7 = scmp.ge.s32.totalorder %s1654_s12, 1  ;;  %p299_p8 = scmp.lt.s32.totalorder %s1654_s12, 3 }
   0xc   : > { %p300_p9 = pnand %p1407_p7, %p299_p8 }
   0xd   : > { %s1409_s21 = sshll.u32 (!%p300_p9), %s1728_s13, 6  ;;  %s1548_s26 = sshll.u32 (!%p300_p9), %s1728_s13, 5 }
   0xe   : > { %303 = sbr.rel (%p300_p9) target bundleno = 767 (0x2ff), region = 56  ;;  %p344_p10 = scmp.lt.s32.totalorder (!%p300_p9), %s1409_s21, 124 }
  0x13   : > { %s2168_s21 = smov (!%p344_p10, %s1409_s21), 124  ;;  %vm474_vm0 = vcmask 261120   ;;  %v1656_v36 = vmov 0   ;;  %v431_v37 = vld [vmem:[%s2153_s2 + $0x28] sm:$0xff]  ;;  %v433_v46 = vld [vmem:[%s2153_s2 + $0x38] sm:$0xff]  ;;  %v430_v47 = vld [vmem:[%s2153_s2 + $0x20] sm:$0xff] }
  0x14   : > { %s1410_s22 = sshll.u32 %s2168_s21, 3  ;;  %1590 = vset.pattern.permute.xlu1 %v1656_v36  ;;  %1589 = vset.pattern.permute.xlu0 %v1656_v36  ;;  %v432_v56 = vld [vmem:[%s2153_s2 + $0x30] sm:$0xff]  ;;  %v426_v57 = vld [vmem:[%s2153_s2] sm:$0xff]  ;;  %vm929_vm1 = vcmask 523264   ;;  %vm1126_vm2 = vcmask 392192   ;;  %vm1240_vm3 = vcmask 130048  }
  0x15   : > { %s1759_s25 = scalar_lea.vmem %s2151_s0, %s1410_s22  ;;  %1591 = vset.pattern.permute.xlu2 %v1656_v36  ;;  %461 = vperm.xlu1 %1590, %v431_v37   ;;  %s336_s22 = sand.u32 1, %s1646_s10  }
  0x16   : > { %v369_v0 = vld [vmem:[%s1759_s25 + $0x78] sm:$0xff]  ;;  %v368_v4 = vld [vmem:[%s1759_s25 + $0x70] sm:$0xff]  ;;  %v367_v8 = vld [vmem:[%s1759_s25 + $0x68] sm:$0xff]  ;;  %471 = vperm.xlu0 %1589, %v433_v46   ;;  %s1408_s23 = sshll.u32 %s336_s22, 5  ;;  %s1329_s16 = scalar_lea.sflag [#allocation3], %s336_s22 }
  0x17   : > { %v385_v1 = vld [vmem:[%s1759_s25 + $0xf8] sm:$0xff]  ;;  %1411 = vmatpush.xpose.msk.msra.mxu0 %vm474_vm0, %v369_v0  ;;  %v384_v5 = vld [vmem:[%s1759_s25 + $0xf0] sm:$0xff]  ;;  %v383_v9 = vld [vmem:[%s1759_s25 + $0xe8] sm:$0xff]  ;;  %s338_s24 = scalar_lea.vmem [#allocation2], %s1408_s23 }
  0x18   : > { %v401_v2 = vld [vmem:[%s1759_s25 + $0x178] sm:$0xff]  ;;  %1435 = vmatpush.xpose.msk.msra.mxu1 %vm474_vm0, %v385_v1  ;;  %v400_v6 = vld [vmem:[%s1759_s25 + $0x170] sm:$0xff]  ;;  %v399_v10 = vld [vmem:[%s1759_s25 + $0x168] sm:$0xff]  ;;  %s1342_s29 = sshll.u32 %s338_s24, 4  ;;  %s1343_s29 = int_to_ptr.vmem [resolvable:$true] %s1342_s29 }
  0x19   : > { %v417_v3 = vld [vmem:[%s1759_s25 + $0x1f8] sm:$0xff]  ;;  %1459 = vmatpush.xpose.msk.msra.mxu2 %vm474_vm0, %v401_v2  ;;  %v416_v7 = vld [vmem:[%s1759_s25 + $0x1f0] sm:$0xff]  ;;  %v415_v11 = vld [vmem:[%s1759_s25 + $0x1e8] sm:$0xff] }
  0x1a   : > { %1483 = vmatpush.xpose.msk.msra.mxu3 %vm474_vm0, %v417_v3  ;;  %v366_v12 = vld [vmem:[%s1759_s25 + $0x60] sm:$0xff]  ;;  %v365_v16 = vld [vmem:[%s1759_s25 + $0x58] sm:$0xff]  ;;  %v364_v20 = vld [vmem:[%s1759_s25 + $0x50] sm:$0xff] }
  0x1b   : > { %1412 = vmatpush.xpose.msk.msra.mxu0 %vm474_vm0, %v368_v4  ;;  %v382_v13 = vld [vmem:[%s1759_s25 + $0xe0] sm:$0xff]  ;;  %v381_v17 = vld [vmem:[%s1759_s25 + $0xd8] sm:$0xff]  ;;  %v380_v21 = vld [vmem:[%s1759_s25 + $0xd0] sm:$0xff] }
  0x1c   : > { %1436 = vmatpush.xpose.msk.msra.mxu1 %vm474_vm0, %v384_v5  ;;  %v398_v14 = vld [vmem:[%s1759_s25 + $0x160] sm:$0xff]  ;;  %v397_v18 = vld [vmem:[%s1759_s25 + $0x158] sm:$0xff]  ;;  %v396_v22 = vld [vmem:[%s1759_s25 + $0x150] sm:$0xff] }
  0x1d   : > { %1460 = vmatpush.xpose.msk.msra.mxu2 %vm474_vm0, %v400_v6  ;;  %v414_v15 = vld [vmem:[%s1759_s25 + $0x1e0] sm:$0xff]  ;;  %v413_v19 = vld [vmem:[%s1759_s25 + $0x1d8] sm:$0xff]  ;;  %v412_v23 = vld [vmem:[%s1759_s25 + $0x1d0] sm:$0xff]  ;;  %456 = vperm.xlu1 %1590, %v430_v47  }
  0x1e   : > { %1484 = vmatpush.xpose.msk.msra.mxu3 %vm474_vm0, %v416_v7  ;;  %v363_v24 = vld [vmem:[%s1759_s25 + $0x48] sm:$0xff]  ;;  %v362_v28 = vld [vmem:[%s1759_s25 + $0x40] sm:$0xff]  ;;  %v361_v32 = vld [vmem:[%s1759_s25 + $0x38] sm:$0xff]  ;;  %466 = vperm.xlu0 %1589, %v432_v56  }
  0x1f   : > { %1413 = vmatpush.xpose.msk.msra.mxu0 %vm474_vm0, %v367_v8  ;;  %v379_v25 = vld [vmem:[%s1759_s25 + $0xc8] sm:$0xff]  ;;  %v378_v29 = vld [vmem:[%s1759_s25 + $0xc0] sm:$0xff]  ;;  %v377_v33 = vld [vmem:[%s1759_s25 + $0xb8] sm:$0xff] }
  0x20   : > { %1437 = vmatpush.xpose.msk.msra.mxu1 %vm474_vm0, %v383_v9  ;;  %v395_v26 = vld [vmem:[%s1759_s25 + $0x148] sm:$0xff]  ;;  %v394_v30 = vld [vmem:[%s1759_s25 + $0x140] sm:$0xff]  ;;  %v393_v34 = vld [vmem:[%s1759_s25 + $0x138] sm:$0xff] }
  0x21   : > { %1461 = vmatpush.xpose.msk.msra.mxu2 %vm474_vm0, %v399_v10  ;;  %v411_v27 = vld [vmem:[%s1759_s25 + $0x1c8] sm:$0xff]  ;;  %v410_v31 = vld [vmem:[%s1759_s25 + $0x1c0] sm:$0xff]  ;;  %v409_v35 = vld [vmem:[%s1759_s25 + $0x1b8] sm:$0xff] }
  0x22   : > { %1485 = vmatpush.xpose.msk.msra.mxu3 %vm474_vm0, %v415_v11  ;;  %v360_v38 = vld [vmem:[%s1759_s25 + $0x30] sm:$0xff]  ;;  %v359_v42 = vld [vmem:[%s1759_s25 + $0x28] sm:$0xff]  ;;  %v358_v48 = vld [vmem:[%s1759_s25 + $0x20] sm:$0xff] }
  0x23   : > { %1414 = vmatpush.xpose.msk.msra.mxu0 %vm474_vm0, %v366_v12  ;;  %v376_v39 = vld [vmem:[%s1759_s25 + $0xb0] sm:$0xff]  ;;  %v375_v43 = vld [vmem:[%s1759_s25 + $0xa8] sm:$0xff]  ;;  %v374_v49 = vld [vmem:[%s1759_s25 + $0xa0] sm:$0xff] }
  0x24   : > { %1438 = vmatpush.xpose.msk.msra.mxu1 %vm474_vm0, %v382_v13  ;;  %v392_v40 = vld [vmem:[%s1759_s25 + $0x130] sm:$0xff]  ;;  %v391_v44 = vld [vmem:[%s1759_s25 + $0x128] sm:$0xff]  ;;  %v390_v50 = vld [vmem:[%s1759_s25 + $0x120] sm:$0xff] }
  0x25   : > { %1462 = vmatpush.xpose.msk.msra.mxu2 %vm474_vm0, %v398_v14  ;;  %v408_v41 = vld [vmem:[%s1759_s25 + $0x1b0] sm:$0xff]  ;;  %v407_v45 = vld [vmem:[%s1759_s25 + $0x1a8] sm:$0xff]  ;;  %v406_v51 = vld [vmem:[%s1759_s25 + $0x1a0] sm:$0xff]  ;;  %436 = vperm.xlu1 %1590, %v426_v57  }
  0x26   : > { %1486 = vmatpush.xpose.msk.msra.mxu3 %vm474_vm0, %v414_v15  ;;  %v357_v52 = vld [vmem:[%s1759_s25 + $0x18] sm:$0xff]  ;;  %v356_v58 = vld [vmem:[%s1759_s25 + $0x10] sm:$0xff]  ;;  %v355_v62 = vld [vmem:[%s1759_s25 + $0x8] sm:$0xff] }
  0x27   : > { %1415 = vmatpush.xpose.msk.msra.mxu0 %vm474_vm0, %v365_v16  ;;  %v373_v53 = vld [vmem:[%s1759_s25 + $0x98] sm:$0xff]  ;;  %v372_v59 = vld [vmem:[%s1759_s25 + $0x90] sm:$0xff]  ;;  %v371_v63 = vld [vmem:[%s1759_s25 + $0x88] sm:$0xff] }
  0x28   : > { %1439 = vmatpush.xpose.msk.msra.mxu1 %vm474_vm0, %v381_v17  ;;  %v389_v54 = vld [vmem:[%s1759_s25 + $0x118] sm:$0xff]  ;;  %v388_v60 = vld [vmem:[%s1759_s25 + $0x110] sm:$0xff]  ;;  %v387_v0 = vld [vmem:[%s1759_s25 + $0x108] sm:$0xff] }
  0x29   : > { %1463 = vmatpush.xpose.msk.msra.mxu2 %vm474_vm0, %v397_v18  ;;  %v405_v55 = vld [vmem:[%s1759_s25 + $0x198] sm:$0xff]  ;;  %v404_v61 = vld [vmem:[%s1759_s25 + $0x190] sm:$0xff]  ;;  %v403_v1 = vld [vmem:[%s1759_s25 + $0x188] sm:$0xff] }
  0x2a   : > { %1487 = vmatpush.xpose.msk.msra.mxu3 %vm474_vm0, %v413_v19  ;;  %v427_v2 = vld [vmem:[%s2153_s2 + $0x8] sm:$0xff]  ;;  %v354_v3 = vld [vmem:[%s1759_s25] sm:$0xff]  ;;  %v420_v9 = vld [vmem:[%s2152_s1 + $0x10] sm:$0xff] }
  0x2b   : > { %1416 = vmatpush.xpose.msk.msra.mxu0 %vm474_vm0, %v364_v20  ;;  %v370_v4 = vld [vmem:[%s1759_s25 + $0x80] sm:$0xff]  ;;  %441 = vperm.xlu0 %1589, %v427_v2   ;;  %v419_v8 = vld [vmem:[%s2152_s1 + $0x8] sm:$0xff]  ;;  %v429_v10 = vld [vmem:[%s2153_s2 + $0x18] sm:$0xff] }
  0x2c   : > { %1440 = vmatpush.xpose.msk.msra.mxu1 %vm474_vm0, %v380_v21  ;;  %v386_v5 = vld [vmem:[%s1759_s25 + $0x100] sm:$0xff]  ;;  %451 = vperm.xlu2 %1591, %v429_v10   ;;  %v421_v12 = vld [vmem:[%s2152_s1 + $0x18] sm:$0xff]  ;;  %v428_v14 = vld [vmem:[%s2153_s2 + $0x10] sm:$0xff] }
  0x2d   : > { %1464 = vmatpush.xpose.msk.msra.mxu2 %vm474_vm0, %v396_v22  ;;  %v402_v6 = vld [vmem:[%s1759_s25 + $0x180] sm:$0xff]  ;;  %v896_v13 = vld [vmem:[%s2155_s4 + $0x18] sm:$0xff]  ;;  %v894_v15 = vld [vmem:[%s2155_s4 + $0x8] sm:$0xff]  ;;  %s1340_s25 = scalar_lea.hbm %s2160_s9, %s1548_s26  ;;  %s1612_s26 = scalar_lea.hbm %s2160_s9, 64 }
  0x2e   : > { %1488 = vmatpush.xpose.msk.msra.mxu3 %vm474_vm0, %v412_v23  ;;  %v418_v7 = vld [vmem:[%s2152_s1] sm:$0xff]  ;;  %916 = vperm.xlu1 %1590, %v896_v13   ;;  %v898_v18 = vld [vmem:[%s2155_s4 + $0x28] sm:$0xff]  ;;  %v895_v22 = vld [vmem:[%s2155_s4 + $0x10] sm:$0xff]  ;;  %s1344_s14 = sshll.u32 %s1340_s25, 4  ;;  %s1345_s14 = int_to_ptr.hbm [resolvable:$true] %s1344_s14 }
  0x2f   : > { %1417 = vmatpush.xpose.msk.msra.mxu0 %vm474_vm0, %v363_v24  ;;  %v897_v11 = vld [vmem:[%s2155_s4 + $0x20] sm:$0xff]  ;;  %v423_v20 = vld [vmem:[%s2152_s1 + $0x28] sm:$0xff]  ;;  %v424_v23 = vld [vmem:[%s2152_s1 + $0x30] sm:$0xff]  ;;  %s1606_s17 = sshra.s32 %s1345_s14, 4  ;;  %s1607_s17 = int_to_ptr.hbm [resolvable:$true] %s1606_s17 }
  0x30   : > { %1441 = vmatpush.xpose.msk.msra.mxu1 %vm474_vm0, %v379_v25  ;;  %v422_v16 = vld [vmem:[%s2152_s1 + $0x20] sm:$0xff]  ;;  %v1115_v24 = vld [vmem:[%s2157_s6 + $0x8] sm:$0xff]  ;;  %v425_v25 = vld [vmem:[%s2152_s1 + $0x38] sm:$0xff]  ;;  %s1608_s21 = scalar_lea.hbm %s1607_s17, 32  ;;  %p1613_p0 = scmp.lt.s32.totalorder %s1607_s17, %s2160_s9 }
  0x31   : > { %1465 = vmatpush.xpose.msk.msra.mxu2 %vm474_vm0, %v395_v26  ;;  %v893_v17 = vld [vmem:[%s2155_s4] sm:$0xff]  ;;  %p1609_p11 = scmp.ne.s32.totalorder %s1607_s17, %s1608_s21  ;;  %p1614_p1 = scmp.lt.s32.totalorder %s1612_s26, %s1608_s21 }
  0x32   : > { %1489 = vmatpush.xpose.msk.msra.mxu3 %vm474_vm0, %v411_v27  ;;  %v1114_v19 = vld [vmem:[%s2157_s6] sm:$0xff] }
  0x33   : > { %1418 = vmatpush.xpose.msk.msra.mxu0 %vm474_vm0, %v362_v28  ;;  %921 = vperm.xlu0 %1589, %v897_v11   ;;  %v1234_v21 = vld [vmem:[%s2159_s8] sm:$0xff]  ;;  %p1610_p12 = pnand %p1609_p11, %p1745_p5  ;;  %p1615_p2 = por %p1614_p1, %p1613_p0 }
  0x34   : > { %1442 = vmatpush.xpose.msk.msra.mxu1 %vm474_vm0, %v378_v29  ;;  %446 = vperm.xlu2 %1591, %v428_v14  }
  0x35   : > { %1466 = vmatpush.xpose.msk.msra.mxu2 %vm474_vm0, %v394_v30  ;;  %p1611_p13 = pneg %p1610_p12 }
  0x36   : > { %1490 = vmatpush.xpose.msk.msra.mxu3 %vm474_vm0, %v410_v31  ;;  %901 = vperm.xlu1 %1590, %v893_v17  }
  0x37   : > { %1419 = vmatpush.xpose.msk.msra.mxu0 %vm474_vm0, %v361_v32  ;;  %p1616_p3 = pnand %p1615_p2, %p1611_p13 }
  0x38   : > { %1443 = vmatpush.xpose.msk.msra.mxu1 %vm474_vm0, %v377_v33 }
  0x39   : > { %1467 = vmatpush.xpose.msk.msra.mxu2 %vm474_vm0, %v393_v34 }
  0x3a   : > { %1491 = vmatpush.xpose.msk.msra.mxu3 %vm474_vm0, %v409_v35 }
  0x3b   : > { %1420 = vmatpush.xpose.msk.msra.mxu0 %vm474_vm0, %v360_v38  ;;  %906 = vperm.xlu0 %1589, %v894_v15  }
  0x3c   : > { %1444 = vmatpush.xpose.msk.msra.mxu1 %vm474_vm0, %v376_v39  ;;  %926 = vperm.xlu2 %1591, %v898_v18  }
  0x3d   : > { %1468 = vmatpush.xpose.msk.msra.mxu2 %vm474_vm0, %v392_v40 }
  0x3e   : > { %1492 = vmatpush.xpose.msk.msra.mxu3 %vm474_vm0, %v408_v41  ;;  %1237 = vperm.xlu1 %1590, %v1234_v21  }
  0x3f   : > { %1421 = vmatpush.xpose.msk.msra.mxu0 %vm474_vm0, %v359_v42 }
  0x40   : > { %1445 = vmatpush.xpose.msk.msra.mxu1 %vm474_vm0, %v375_v43 }
  0x41   : > { %1469 = vmatpush.xpose.msk.msra.mxu2 %vm474_vm0, %v391_v44 }
  0x42   : > { %1493 = vmatpush.xpose.msk.msra.mxu3 %vm474_vm0, %v407_v45 }
  0x43   : > { %1422 = vmatpush.xpose.msk.msra.mxu0 %vm474_vm0, %v358_v48  ;;  %1118 = vperm.xlu0 %1589, %v1114_v19  }
  0x44   : > { %1446 = vmatpush.xpose.msk.msra.mxu1 %vm474_vm0, %v374_v49  ;;  %911 = vperm.xlu2 %1591, %v895_v22  }
  0x45   : > { %1470 = vmatpush.xpose.msk.msra.mxu2 %vm474_vm0, %v390_v50 }
  0x46   : > { %1494 = vmatpush.xpose.msk.msra.mxu3 %vm474_vm0, %v406_v51 }
  0x47   : > { %1423 = vmatpush.xpose.msk.msra.mxu0 %vm474_vm0, %v357_v52 }
  0x48   : > { %1447 = vmatpush.xpose.msk.msra.mxu1 %vm474_vm0, %v373_v53 }
  0x49   : > { %1471 = vmatpush.xpose.msk.msra.mxu2 %vm474_vm0, %v389_v54 }
  0x4a   : > { %1495 = vmatpush.xpose.msk.msra.mxu3 %vm474_vm0, %v405_v55 }
  0x4b   : > { %1424 = vmatpush.xpose.msk.msra.mxu0 %vm474_vm0, %v356_v58 }
  0x4c   : > { %1448 = vmatpush.xpose.msk.msra.mxu1 %vm474_vm0, %v372_v59  ;;  %1123 = vperm.xlu2 %1591, %v1115_v24  }
  0x4d   : > { %1472 = vmatpush.xpose.msk.msra.mxu2 %vm474_vm0, %v388_v60 }
  0x4e   : > { %1496 = vmatpush.xpose.msk.msra.mxu3 %vm474_vm0, %v404_v61 }
  0x4f   : > { %1425 = vmatpush.xpose.msk.msra.mxu0 %vm474_vm0, %v355_v62 }
  0x50   : > { %1449 = vmatpush.xpose.msk.msra.mxu1 %vm474_vm0, %v371_v63 }
  0x51   : > { %1473 = vmatpush.xpose.msk.msra.mxu2 %vm474_vm0, %v387_v0 }
  0x52   : > { %1497 = vmatpush.xpose.msk.msra.mxu3 %vm474_vm0, %v403_v1 }
  0x53   : > { %1426 = vmatpush.xpose.msk.msra.mxu0 %vm474_vm0, %v354_v3 }
  0x54   : > { %1450 = vmatpush.xpose.msk.msra.mxu1 %vm474_vm0, %v370_v4 }
  0x55   : > { %1474 = vmatpush.xpose.msk.msra.mxu2 %vm474_vm0, %v386_v5 }
  0x56   : > { %1498 = vmatpush.xpose.msk.msra.mxu3 %vm474_vm0, %v402_v6  ;;  %1427 = vmatmul.msk.f32.vlgmr.msra.gmra.mxu0 %vm474_vm0, %v418_v7 }
  0x57   : > { %1451 = vmatmul.msk.f32.vlgmr.msra.gmra.mxu1 %vm474_vm0, %v418_v7 }
  0x58   : > { %1475 = vmatmul.msk.f32.vlgmr.msra.gmra.mxu2 %vm474_vm0, %v418_v7 }
  0x59   : > { %1499 = vmatmul.msk.f32.vlgmr.msra.gmra.mxu3 %vm474_vm0, %v418_v7 }
  0x5e   : > { %1428 = vmatmul.msk.f32.gmra.mxu0 %vm474_vm0, %v419_v8 }
  0x5f   : > { %1452 = vmatmul.msk.f32.gmra.mxu1 %vm474_vm0, %v419_v8 }
  0x60   : > { %1476 = vmatmul.msk.f32.gmra.mxu2 %vm474_vm0, %v419_v8 }
  0x61   : > { %1500 = vmatmul.msk.f32.gmra.mxu3 %vm474_vm0, %v419_v8 }
  0x66   : > { %1429 = vmatmul.msk.f32.gmra.mxu0 %vm474_vm0, %v420_v9 }
  0x67   : > { %1453 = vmatmul.msk.f32.gmra.mxu1 %vm474_vm0, %v420_v9 }
  0x68   : > { %1477 = vmatmul.msk.f32.gmra.mxu2 %vm474_vm0, %v420_v9 }
  0x69   : > { %1501 = vmatmul.msk.f32.gmra.mxu3 %vm474_vm0, %v420_v9 }
  0x6e   : > { %1430 = vmatmul.msk.f32.gmra.mxu0 %vm474_vm0, %v421_v12 }
  0x6f   : > { %1454 = vmatmul.msk.f32.gmra.mxu1 %vm474_vm0, %v421_v12 }
  0x70   : > { %1478 = vmatmul.msk.f32.gmra.mxu2 %vm474_vm0, %v421_v12 }
  0x71   : > { %1502 = vmatmul.msk.f32.gmra.mxu3 %vm474_vm0, %v421_v12 }
  0x76   : > { %1431 = vmatmul.msk.f32.gmra.mxu0 %vm474_vm0, %v422_v16 }
  0x77   : > { %1455 = vmatmul.msk.f32.gmra.mxu1 %vm474_vm0, %v422_v16 }
  0x78   : > { %1479 = vmatmul.msk.f32.gmra.mxu2 %vm474_vm0, %v422_v16 }
  0x79   : > { %1503 = vmatmul.msk.f32.gmra.mxu3 %vm474_vm0, %v422_v16 }
  0x7e   : > { %1432 = vmatmul.msk.f32.gmra.mxu0 %vm474_vm0, %v423_v20 }
  0x7f   : > { %1456 = vmatmul.msk.f32.gmra.mxu1 %vm474_vm0, %v423_v20 }
  0x80   : > { %1480 = vmatmul.msk.f32.gmra.mxu2 %vm474_vm0, %v423_v20 }
  0x81   : > { %1504 = vmatmul.msk.f32.gmra.mxu3 %vm474_vm0, %v423_v20 }
  0x86   : > { %1433 = vmatmul.msk.f32.gmra.mxu0 %vm474_vm0, %v424_v23  ;;  %v2020_v55 = vpop.permute.xlu2 %451 }
  0x87   : > { %1457 = vmatmul.msk.f32.gmra.mxu1 %vm474_vm0, %v424_v23  ;;  %v462_v49 = vpop.permute.xlu1 %461 }
  0x88   : > { %1481 = vmatmul.msk.f32.gmra.mxu2 %vm474_vm0, %v424_v23  ;;  %v472_v48 = vpop.permute.xlu0 %471 }
  0x89   : > { %1505 = vmatmul.msk.f32.gmra.mxu3 %vm474_vm0, %v424_v23 }
  0x8e   : > { %1434 = vmatmul.msk.f32.gmra.mxu0 %vm474_vm0, %v425_v25  ;;  %v447_v15 = vpop.permute.xlu2 %446 }
  0x8f   : > { %1458 = vmatmul.msk.f32.gmra.mxu1 %vm474_vm0, %v425_v25  ;;  %v457_v2 = vpop.permute.xlu1 %456 }
  0x90   : > { %1482 = vmatmul.msk.f32.gmra.mxu2 %vm474_vm0, %v425_v25  ;;  %v467_v54 = vpop.permute.xlu0 %466 }
  0x91   : > { %1506 = vmatmul.msk.f32.gmra.mxu3 %vm474_vm0, %v425_v25 }
  0x9d   : > { %v442_v24 = vpop.permute.xlu0 %441 }
  0xd3   : > { %v1996_v26 = vpop.f32.mrf.mxu0 }
  0xd4   : > { %v1998_v27 = vpop.f32.mrf.mxu1 }
  0xdb   : > { %v2000_v28 = vpop.f32.mrf.mxu2  ;;  %v2004_v30 = vpop.f32.mrf.mxu0 }
  0xdc   : > { %v2002_v29 = vpop.f32.mrf.mxu3  ;;  %v2006_v31 = vpop.f32.mrf.mxu1 }
  0xe3   : > { %v2008_v32 = vpop.f32.mrf.mxu2  ;;  %v714_v34 = vpop.f32.mrf.mxu0 }
  0xe4   : > { %v2010_v33 = vpop.f32.mrf.mxu3  ;;  %v755_v35 = vpop.f32.mrf.mxu1  ;;  %v715_v22 = vadd.f32 %v714_v34, %v447_v15 }
  0xe5   : > { %v756_v23 = vadd.f32 %v755_v35, %v447_v15 }
  0xe6   : > { %v863_v34 = vmax.f32 %v715_v22, 0.0 }
  0xe7   : > { %v864_v35 = vmax.f32 %v756_v23, 0.0 }
  0xeb   : > { %v2012_v36 = vpop.f32.mrf.mxu2  ;;  %v717_v38 = vpop.f32.mrf.mxu0 }
  0xec   : > { %v2014_v37 = vpop.f32.mrf.mxu3  ;;  %v758_v39 = vpop.f32.mrf.mxu1  ;;  %v718_v11 = vadd.f32 %v717_v38, %v2020_v55 }
  0xed   : > { %v759_v12 = vadd.f32 %v758_v39, %v2020_v55 }
  0xf3   : > { %v2016_v40 = vpop.f32.mrf.mxu2  ;;  %v720_v42 = vpop.f32.mrf.mxu0 }
  0xf4   : > { %v2018_v41 = vpop.f32.mrf.mxu3  ;;  %v761_v43 = vpop.f32.mrf.mxu1  ;;  %v721_v5 = vadd.f32 %v720_v42, %v457_v2 }
  0xf5   : > { %v762_v6 = vadd.f32 %v761_v43, %v457_v2  ;;  %v867_v43 = vmax.f32 %v718_v11, 0.0 }
  0xf6   : > { %v871_v20 = vmax.f32 %v721_v5, 0.0  ;;  %v890_v5 = vld [vmem:[%s2154_s3 + $0x18] sm:$0xff] }
  0xf7   : > { %v872_v21 = vmax.f32 %v762_v6, 0.0  ;;  %v891_v6 = vld [vmem:[%s2154_s3 + $0x20] sm:$0xff] }
  0xfb   : > { %v802_v44 = vpop.f32.mrf.mxu2  ;;  %v723_v46 = vpop.f32.mrf.mxu0 }
  0xfc   : > { %v843_v45 = vpop.f32.mrf.mxu3  ;;  %v764_v47 = vpop.f32.mrf.mxu1  ;;  %v724_v58 = vadd.f32 %v723_v46, %v462_v49  ;;  %v868_v46 = vmax.f32 %v759_v12, 0.0 }
  0xfd   : > { %v765_v59 = vadd.f32 %v764_v47, %v462_v49  ;;  %v712_v47 = vadd.f32 %v2004_v30, %v442_v24  ;;  %v800_v30 = vadd.f32 %v2016_v40, %v2020_v55  ;;  %v794_v40 = vadd.f32 %v2008_v32, %v442_v24 }
  0xfe   : > { %v875_v7 = vmax.f32 %v724_v58, 0.0 }
  0xff   : > { %v876_v8 = vmax.f32 %v765_v59, 0.0  ;;  %v797_v59 = vadd.f32 %v2012_v36, %v447_v15  ;;  %v887_v36 = vld [vmem:[%s2154_s3] sm:$0xff] }
 0x103   : > { %v805_v50 = vpop.f32.mrf.mxu2  ;;  %v726_v52 = vpop.f32.mrf.mxu0 }
 0x104   : > { %v846_v51 = vpop.f32.mrf.mxu3  ;;  %v767_v53 = vpop.f32.mrf.mxu1  ;;  %v727_v62 = vadd.f32 %v726_v52, %v467_v54  ;;  %v806_v25 = vadd.f32 %v805_v50, %v462_v49  ;;  %v753_v52 = vadd.f32 %v2006_v31, %v442_v24  ;;  %v841_v31 = vadd.f32 %v2018_v41, %v2020_v55 }
 0x105   : > { %v768_v63 = vadd.f32 %v767_v53, %v467_v54  ;;  %v847_v38 = vadd.f32 %v846_v51, %v462_v49  ;;  %v803_v53 = vadd.f32 %v802_v44, %v457_v2  ;;  %v859_v51 = vmax.f32 %v712_v47, 0.0 }
 0x106   : > { %v879_v9 = vmax.f32 %v727_v62, 0.0  ;;  %v877_v44 = vmax.f32 %v806_v25, 0.0  ;;  %v860_v58 = vmax.f32 %v753_v52, 0.0  ;;  %v869_v62 = vmax.f32 %v800_v30, 0.0  ;;  %v922_v25 = vpop.permute.xlu0 %921 }
 0x107   : > { %v880_v10 = vmax.f32 %v768_v63, 0.0  ;;  %v870_v63 = vmax.f32 %v841_v31, 0.0 }
 0x10b   : > { %v808_v56 = vpop.f32.mrf.mxu2  ;;  %v729_v60 = vpop.f32.mrf.mxu0 }
 0x10c   : > { %v849_v57 = vpop.f32.mrf.mxu3  ;;  %v770_v61 = vpop.f32.mrf.mxu1  ;;  %v730_v0 = vadd.f32 %v729_v60, %v472_v48  ;;  %v809_v16 = vadd.f32 %v808_v56, %v467_v54  ;;  %v873_v60 = vmax.f32 %v803_v53, 0.0 }
 0x10d   : > { %v771_v1 = vadd.f32 %v770_v61, %v472_v48  ;;  %v850_v17 = vadd.f32 %v849_v57, %v467_v54  ;;  %v844_v54 = vadd.f32 %v843_v45, %v457_v2  ;;  %v878_v45 = vmax.f32 %v847_v38, 0.0 }
 0x10e   : > { %v883_v3 = vmax.f32 %v730_v0, 0.0  ;;  %v881_v56 = vmax.f32 %v809_v16, 0.0  ;;  %v835_v61 = vadd.f32 %v2010_v33, %v442_v24  ;;  %v865_v0 = vmax.f32 %v797_v59, 0.0  ;;  %v927_v24 = vpop.permute.xlu2 %926 }
 0x10f   : > { %v884_v4 = vmax.f32 %v771_v1, 0.0  ;;  %v882_v57 = vmax.f32 %v850_v17, 0.0  ;;  %v861_v33 = vmax.f32 %v794_v40, 0.0 }
 0x110   : > { %956 = vmatpush.msrb.mxu0 %v883_v3  ;;  %v862_v2 = vmax.f32 %v835_v61, 0.0 }
 0x111   : > { %991 = vmatpush.msrb.mxu1 %v884_v4 }
 0x112   : > { %957 = vmatpush.msrb.mxu0 %v879_v9 }
 0x113   : > { %v811_v13 = vpop.f32.mrf.mxu2  ;;  %992 = vmatpush.msrb.mxu1 %v880_v10 }
 0x114   : > { %v852_v14 = vpop.f32.mrf.mxu3  ;;  %v812_v18 = vadd.f32 %v811_v13, %v472_v48  ;;  %958 = vmatpush.msrb.mxu0 %v875_v7  ;;  %v892_v7 = vld [vmem:[%s2154_s3 + $0x28] sm:$0xff] }
 0x115   : > { %v853_v19 = vadd.f32 %v852_v14, %v472_v48  ;;  %993 = vmatpush.msrb.mxu1 %v876_v8  ;;  %v437_v48 = vpop.permute.xlu1 %436 }
 0x116   : > { %v885_v42 = vmax.f32 %v812_v18, 0.0  ;;  %959 = vmatpush.msrb.mxu0 %v871_v20  ;;  %v709_v49 = vadd.f32 %v1996_v26, %v437_v48  ;;  %v750_v50 = vadd.f32 %v1998_v27, %v437_v48  ;;  %v838_v26 = vadd.f32 %v2014_v37, %v447_v15 }
 0x117   : > { %v886_v39 = vmax.f32 %v853_v19, 0.0  ;;  %994 = vmatpush.msrb.mxu1 %v872_v21  ;;  %v874_v27 = vmax.f32 %v844_v54, 0.0  ;;  %v791_v37 = vadd.f32 %v2000_v28, %v437_v48  ;;  %v832_v32 = vadd.f32 %v2002_v29, %v437_v48  ;;  %v888_v28 = vld [vmem:[%s2154_s3 + $0x8] sm:$0xff]  ;;  %v889_v29 = vld [vmem:[%s2154_s3 + $0x10] sm:$0xff]  ;;  %v912_v54 = vpop.permute.xlu2 %911 }
 0x118   : > { %1026 = vmatpush.msrb.mxu2 %v885_v42  ;;  %960 = vmatpush.msrb.mxu0 %v867_v43  ;;  %v855_v41 = vmax.f32 %v709_v49, 0.0  ;;  %v856_v55 = vmax.f32 %v750_v50, 0.0  ;;  %v866_v1 = vmax.f32 %v838_v26, 0.0 }
 0x119   : > { %1061 = vmatpush.msrb.mxu3 %v886_v39  ;;  %995 = vmatpush.msrb.mxu1 %v868_v46  ;;  %v857_v3 = vmax.f32 %v791_v37, 0.0  ;;  %v858_v4 = vmax.f32 %v832_v32, 0.0 }
 0x11a   : > { %1027 = vmatpush.msrb.mxu2 %v881_v56  ;;  %961 = vmatpush.msrb.mxu0 %v863_v34 }
 0x11b   : > { %1062 = vmatpush.msrb.mxu3 %v882_v57  ;;  %996 = vmatpush.msrb.mxu1 %v864_v35 }
 0x11c   : > { %1028 = vmatpush.msrb.mxu2 %v877_v44  ;;  %962 = vmatpush.msrb.mxu0 %v859_v51  ;;  %v907_v51 = vpop.permute.xlu0 %906 }
 0x11d   : > { %1063 = vmatpush.msrb.mxu3 %v878_v45  ;;  %997 = vmatpush.msrb.mxu1 %v860_v58  ;;  %v917_v39 = vpop.permute.xlu1 %916 }
 0x11e   : > { %1029 = vmatpush.msrb.mxu2 %v873_v60  ;;  %963 = vmatpush.msrb.mxu0 %v855_v41 }
 0x11f   : > { %1064 = vmatpush.msrb.mxu3 %v874_v27  ;;  %998 = vmatpush.msrb.mxu1 %v856_v55 }
 0x120   : > { %1030 = vmatpush.msrb.mxu2 %v869_v62  ;;  %1507 = vmatmul.msk.f32.vlgmr.msrb.gmra.mxu0 %vm929_vm1, %v887_v36 }
 0x121   : > { %1065 = vmatpush.msrb.mxu3 %v870_v63  ;;  %1513 = vmatmul.msk.f32.vlgmr.msrb.gmra.mxu1 %vm929_vm1, %v887_v36 }
 0x122   : > { %1031 = vmatpush.msrb.mxu2 %v865_v0 }
 0x123   : > { %1066 = vmatpush.msrb.mxu3 %v866_v1 }
 0x124   : > { %1032 = vmatpush.msrb.mxu2 %v861_v33 }
 0x125   : > { %1067 = vmatpush.msrb.mxu3 %v862_v2  ;;  %v902_v58 = vpop.permute.xlu1 %901 }
 0x126   : > { %1033 = vmatpush.msrb.mxu2 %v857_v3 }
 0x127   : > { %1068 = vmatpush.msrb.mxu3 %v858_v4  ;;  %1519 = vmatmul.msk.f32.vlgmr.msrb.gmra.mxu2 %vm929_vm1, %v887_v36  ;;  %v1112_v4 = vld [vmem:[%s2156_s5] sm:$0xff] }
 0x128   : > { %1525 = vmatmul.msk.f32.vlgmr.msrb.gmra.mxu3 %vm929_vm1, %v887_v36  ;;  %1508 = vmatmul.msk.f32.gmra.mxu0 %vm929_vm1, %v888_v28 }
 0x129   : > { %1514 = vmatmul.msk.f32.gmra.mxu1 %vm929_vm1, %v888_v28 }
 0x12f   : > { %1520 = vmatmul.msk.f32.gmra.mxu2 %vm929_vm1, %v888_v28 }
 0x130   : > { %1526 = vmatmul.msk.f32.gmra.mxu3 %vm929_vm1, %v888_v28  ;;  %1509 = vmatmul.msk.f32.gmra.mxu0 %vm929_vm1, %v889_v29 }
 0x131   : > { %1515 = vmatmul.msk.f32.gmra.mxu1 %vm929_vm1, %v889_v29 }
 0x137   : > { %1521 = vmatmul.msk.f32.gmra.mxu2 %vm929_vm1, %v889_v29 }
 0x138   : > { %1527 = vmatmul.msk.f32.gmra.mxu3 %vm929_vm1, %v889_v29  ;;  %1510 = vmatmul.msk.f32.gmra.mxu0 %vm929_vm1, %v890_v5 }
 0x139   : > { %1516 = vmatmul.msk.f32.gmra.mxu1 %vm929_vm1, %v890_v5 }
 0x13f   : > { %1522 = vmatmul.msk.f32.gmra.mxu2 %vm929_vm1, %v890_v5 }
 0x140   : > { %1528 = vmatmul.msk.f32.gmra.mxu3 %vm929_vm1, %v890_v5  ;;  %1511 = vmatmul.msk.f32.gmra.mxu0 %vm929_vm1, %v891_v6 }
 0x141   : > { %1517 = vmatmul.msk.f32.gmra.mxu1 %vm929_vm1, %v891_v6 }
 0x147   : > { %1523 = vmatmul.msk.f32.gmra.mxu2 %vm929_vm1, %v891_v6 }
 0x148   : > { %1529 = vmatmul.msk.f32.gmra.mxu3 %vm929_vm1, %v891_v6  ;;  %1512 = vmatmul.msk.f32.gmra.mxu0 %vm929_vm1, %v892_v7 }
 0x149   : > { %1518 = vmatmul.msk.f32.gmra.mxu1 %vm929_vm1, %v892_v7 }
 0x14f   : > { %1524 = vmatmul.msk.f32.gmra.mxu2 %vm929_vm1, %v892_v7 }
 0x150   : > { %1530 = vmatmul.msk.f32.gmra.mxu3 %vm929_vm1, %v892_v7 }
 0x19d   : > { %v965_v8 = vpop.f32.mrf.mxu0 }
 0x19e   : > { %v1000_v9 = vpop.f32.mrf.mxu1  ;;  %v966_v40 = vadd.f32 %v965_v8, %v902_v58 }
 0x19f   : > { %v1001_v41 = vadd.f32 %v1000_v9, %v902_v58 }
 0x1a0   : > { %v1088_v36 = vmax.f32 %v966_v40, 0.0 }
 0x1a1   : > { %v1089_v37 = vmax.f32 %v1001_v41, 0.0 }
 0x1a5   : > { %v968_v10 = vpop.f32.mrf.mxu0 }
 0x1a6   : > { %v1003_v11 = vpop.f32.mrf.mxu1  ;;  %v969_v59 = vadd.f32 %v968_v10, %v907_v51 }
 0x1a7   : > { %v1004_v26 = vadd.f32 %v1003_v11, %v907_v51 }
 0x1a8   : > { %v1092_v62 = vmax.f32 %v969_v59, 0.0 }
 0x1a9   : > { %v1093_v63 = vmax.f32 %v1004_v26, 0.0 }
 0x1aa   : > { %v2080_v12 = vpop.f32.mrf.mxu2 }
 0x1ab   : > { %v2082_v13 = vpop.f32.mrf.mxu3 }
 0x1ad   : > { %v971_v14 = vpop.f32.mrf.mxu0 }
 0x1ae   : > { %v1006_v15 = vpop.f32.mrf.mxu1  ;;  %v972_v30 = vadd.f32 %v971_v14, %v912_v54 }
 0x1af   : > { %v1007_v31 = vadd.f32 %v1006_v15, %v912_v54 }
 0x1b0   : > { %v1096_v55 = vmax.f32 %v972_v30, 0.0 }
 0x1b1   : > { %v1097_v61 = vmax.f32 %v1007_v31, 0.0 }
 0x1b2   : > { %v2084_v16 = vpop.f32.mrf.mxu2 }
 0x1b3   : > { %v2086_v17 = vpop.f32.mrf.mxu3  ;;  %v1039_v11 = vadd.f32 %v2084_v16, %v907_v51 }
 0x1b4   : > { %v1074_v14 = vadd.f32 %v2086_v17, %v907_v51 }
 0x1b5   : > { %v974_v18 = vpop.f32.mrf.mxu0 }
 0x1b6   : > { %v1009_v19 = vpop.f32.mrf.mxu1  ;;  %v975_v56 = vadd.f32 %v974_v18, %v917_v39  ;;  %v1095_v16 = vmax.f32 %v1074_v14, 0.0 }
 0x1b7   : > { %v1010_v57 = vadd.f32 %v1009_v19, %v917_v39  ;;  %v1036_v19 = vadd.f32 %v2080_v12, %v902_v58 }
 0x1b8   : > { %v1100_v60 = vmax.f32 %v975_v56, 0.0 }
 0x1b9   : > { %v1101_v27 = vmax.f32 %v1010_v57, 0.0  ;;  %v1090_v17 = vmax.f32 %v1036_v19, 0.0 }
 0x1ba   : > { %v2088_v20 = vpop.f32.mrf.mxu2 }
 0x1bb   : > { %v2090_v21 = vpop.f32.mrf.mxu3  ;;  %v1042_v7 = vadd.f32 %v2088_v20, %v912_v54 }
 0x1bc   : > { %v1077_v8 = vadd.f32 %v2090_v21, %v912_v54  ;;  %v1113_v21 = vld [vmem:[%s2156_s5 + $0x8] sm:$0xff] }
 0x1bd   : > { %v977_v22 = vpop.f32.mrf.mxu0 }
 0x1be   : > { %v1012_v23 = vpop.f32.mrf.mxu1  ;;  %v978_v47 = vadd.f32 %v977_v22, %v922_v25  ;;  %v1071_v22 = vadd.f32 %v2082_v13, %v902_v58  ;;  %v1099_v20 = vmax.f32 %v1077_v8, 0.0 }
 0x1bf   : > { %v1013_v52 = vadd.f32 %v1012_v23, %v922_v25  ;;  %v1098_v23 = vmax.f32 %v1042_v7, 0.0 }
 0x1c0   : > { %v1104_v44 = vmax.f32 %v978_v47, 0.0  ;;  %v1091_v12 = vmax.f32 %v1071_v22, 0.0 }
 0x1c1   : > { %v1105_v45 = vmax.f32 %v1013_v52, 0.0 }
 0x1c2   : > { %v1044_v38 = vpop.f32.mrf.mxu2 }
 0x1c3   : > { %v1079_v42 = vpop.f32.mrf.mxu3  ;;  %v1045_v28 = vadd.f32 %v1044_v38, %v917_v39  ;;  %v1119_v38 = vpop.permute.xlu0 %1118 }
 0x1c4   : > { %v1080_v29 = vadd.f32 %v1079_v42, %v917_v39  ;;  %v1124_v42 = vpop.permute.xlu2 %1123 }
 0x1c5   : > { %v980_v43 = vpop.f32.mrf.mxu0  ;;  %v1102_v15 = vmax.f32 %v1045_v28, 0.0 }
 0x1c6   : > { %v1015_v46 = vpop.f32.mrf.mxu1  ;;  %v981_v48 = vadd.f32 %v980_v43, %v927_v24  ;;  %v1103_v18 = vmax.f32 %v1080_v29, 0.0 }
 0x1c7   : > { %v1016_v53 = vadd.f32 %v1015_v46, %v927_v24 }
 0x1c8   : > { %v1108_v34 = vmax.f32 %v981_v48, 0.0 }
 0x1c9   : > { %v1109_v35 = vmax.f32 %v1016_v53, 0.0 }
 0x1ca   : > { %v1047_v49 = vpop.f32.mrf.mxu2  ;;  %1143 = vmatpush.msra.mxu0 %v1108_v34  ;;  %v1233_v34 = vld [vmem:[%s2158_s7] sm:$0xff] }
 0x1cb   : > { %v1082_v50 = vpop.f32.mrf.mxu3  ;;  %1166 = vmatpush.msra.mxu1 %v1109_v35  ;;  %v1048_v32 = vadd.f32 %v1047_v49, %v922_v25 }
 0x1cc   : > { %1144 = vmatpush.msra.mxu0 %v1104_v44  ;;  %v1083_v33 = vadd.f32 %v1082_v50, %v922_v25 }
 0x1cd   : > { %1167 = vmatpush.msra.mxu1 %v1105_v45  ;;  %v1106_v9 = vmax.f32 %v1048_v32, 0.0 }
 0x1ce   : > { %1145 = vmatpush.msra.mxu0 %v1100_v60  ;;  %v1107_v10 = vmax.f32 %v1083_v33, 0.0 }
 0x1cf   : > { %1168 = vmatpush.msra.mxu1 %v1101_v27  ;;  %v1238_v27 = vpop.permute.xlu1 %1237 }
 0x1d0   : > { %1146 = vmatpush.msra.mxu0 %v1096_v55 }
 0x1d1   : > { %1169 = vmatpush.msra.mxu1 %v1097_v61 }
 0x1d2   : > { %v1050_v0 = vpop.f32.mrf.mxu2  ;;  %1147 = vmatpush.msra.mxu0 %v1092_v62 }
 0x1d3   : > { %v1085_v1 = vpop.f32.mrf.mxu3  ;;  %v1051_v2 = vadd.f32 %v1050_v0, %v927_v24  ;;  %1170 = vmatpush.msra.mxu1 %v1093_v63 }
 0x1d4   : > { %v1086_v3 = vadd.f32 %v1085_v1, %v927_v24  ;;  %1148 = vmatpush.msra.mxu0 %v1088_v36  ;;  %v1094_v24 = vmax.f32 %v1039_v11, 0.0 }
 0x1d5   : > { %v1110_v5 = vmax.f32 %v1051_v2, 0.0  ;;  %1171 = vmatpush.msra.mxu1 %v1089_v37  ;;  %1531 = vmatmul.msk.f32.vlgmr.msra.gmra.mxu0 %vm1126_vm2, %v1112_v4 }
 0x1d6   : > { %v1111_v6 = vmax.f32 %v1086_v3, 0.0  ;;  %1533 = vmatmul.msk.f32.vlgmr.msra.gmra.mxu1 %vm1126_vm2, %v1112_v4 }
 0x1d7   : > { %1189 = vmatpush.msra.mxu2 %v1110_v5 }
 0x1d8   : > { %1212 = vmatpush.msra.mxu3 %v1111_v6 }
 0x1d9   : > { %1190 = vmatpush.msra.mxu2 %v1106_v9 }
 0x1da   : > { %1213 = vmatpush.msra.mxu3 %v1107_v10 }
 0x1db   : > { %1191 = vmatpush.msra.mxu2 %v1102_v15 }
 0x1dc   : > { %1214 = vmatpush.msra.mxu3 %v1103_v18 }
 0x1dd   : > { %1192 = vmatpush.msra.mxu2 %v1098_v23  ;;  %1532 = vmatmul.msk.f32.gmra.mxu0 %vm1126_vm2, %v1113_v21 }
 0x1de   : > { %1215 = vmatpush.msra.mxu3 %v1099_v20  ;;  %1534 = vmatmul.msk.f32.gmra.mxu1 %vm1126_vm2, %v1113_v21 }
 0x1df   : > { %1193 = vmatpush.msra.mxu2 %v1094_v24 }
 0x1e0   : > { %1216 = vmatpush.msra.mxu3 %v1095_v16 }
 0x1e1   : > { %1194 = vmatpush.msra.mxu2 %v1090_v17 }
 0x1e2   : > { %1217 = vmatpush.msra.mxu3 %v1091_v12  ;;  %1535 = vmatmul.msk.f32.vlgmr.msra.gmra.mxu2 %vm1126_vm2, %v1112_v4 }
 0x1e3   : > { %1537 = vmatmul.msk.f32.vlgmr.msra.gmra.mxu3 %vm1126_vm2, %v1112_v4 }
 0x1ea   : > { %1536 = vmatmul.msk.f32.gmra.mxu2 %vm1126_vm2, %v1113_v21 }
 0x1eb   : > { %1538 = vmatmul.msk.f32.gmra.mxu3 %vm1126_vm2, %v1113_v21 }
 0x252   : > { %v1150_v13 = vpop.f32.mrf.mxu0 }
 0x253   : > { %v1173_v25 = vpop.f32.mrf.mxu1  ;;  %v1151_v46 = vadd.f32 %v1150_v13, %v1119_v38 }
 0x254   : > { %v1174_v47 = vadd.f32 %v1173_v25, %v1119_v38 }
 0x255   : > { %v1225_v56 = vmax.f32 %v1151_v46, 0.0 }
 0x256   : > { %v1226_v57 = vmax.f32 %v1174_v47, 0.0 }
 0x25a   : > { %v1153_v39 = vpop.f32.mrf.mxu0 }
 0x25b   : > { %v1176_v43 = vpop.f32.mrf.mxu1  ;;  %v1154_v52 = vadd.f32 %v1153_v39, %v1124_v42 }
 0x25c   : > { %v1177_v48 = vadd.f32 %v1176_v43, %v1124_v42 }
 0x25d   : > { %v1229_v53 = vmax.f32 %v1154_v52, 0.0 }
 0x25e   : > { %v1230_v54 = vmax.f32 %v1177_v48, 0.0 }
 0x25f   : > { %1258 = vmatpush.msrb.mxu0 %v1229_v53 }
 0x260   : > { %1278 = vmatpush.msrb.mxu1 %v1230_v54 }
 0x261   : > { %1259 = vmatpush.msrb.mxu0 %v1225_v56 }
 0x262   : > { %1279 = vmatpush.msrb.mxu1 %v1226_v57  ;;  %1539 = vmatmul.msk.f32.vlgmr.msrb.gmra.mxu0 %vm1240_vm3, %v1233_v34 }
 0x263   : > { %1540 = vmatmul.msk.f32.vlgmr.msrb.gmra.mxu1 %vm1240_vm3, %v1233_v34 }
 0x265   : > { %v1196_v35 = vpop.f32.mrf.mxu2 }
 0x266   : > { %v1219_v49 = vpop.f32.mrf.mxu3  ;;  %v1197_v31 = vadd.f32 %v1196_v35, %v1119_v38 }
 0x267   : > { %v1220_v44 = vadd.f32 %v1219_v49, %v1119_v38 }
 0x268   : > { %v1227_v26 = vmax.f32 %v1197_v31, 0.0 }
 0x269   : > { %v1228_v60 = vmax.f32 %v1220_v44, 0.0 }
 0x26d   : > { %v1199_v50 = vpop.f32.mrf.mxu2 }
 0x26e   : > { %v1222_v30 = vpop.f32.mrf.mxu3  ;;  %v1200_v45 = vadd.f32 %v1199_v50, %v1124_v42 }
 0x26f   : > { %v1223_v51 = vadd.f32 %v1222_v30, %v1124_v42 }
 0x270   : > { %v1231_v58 = vmax.f32 %v1200_v45, 0.0 }
 0x271   : > { %v1232_v59 = vmax.f32 %v1223_v51, 0.0 }
 0x272   : > { %1298 = vmatpush.msrb.mxu2 %v1231_v58 }
 0x273   : > { %1318 = vmatpush.msrb.mxu3 %v1232_v59 }
 0x274   : > { %1299 = vmatpush.msrb.mxu2 %v1227_v26 }
 0x275   : > { %1319 = vmatpush.msrb.mxu3 %v1228_v60  ;;  %1541 = vmatmul.msk.f32.vlgmr.msrb.gmra.mxu2 %vm1240_vm3, %v1233_v34 }
 0x276   : > { %1542 = vmatmul.msk.f32.vlgmr.msrb.gmra.mxu3 %vm1240_vm3, %v1233_v34 }
 0x2df   : > { %v1261_v40 = vpop.f32.mrf.mxu0 }
 0x2e0   : > { %v1281_v41 = vpop.f32.mrf.mxu1  ;;  %v1262_v55 = vadd.f32 %v1261_v40, %v1238_v27 }
 0x2e1   : > { %v1282_v61 = vadd.f32 %v1281_v41, %v1238_v27 }
 0x2e2   : > { %1324 = vst [vmem:[%s338_s24] sm:$0xff] %v1262_v55 }
 0x2e3   : > { %1325 = vst [vmem:[%s338_s24 + $0x8] sm:$0xff] %v1282_v61 }
 0x2f8   : > { %v1301_v62 = vpop.f32.mrf.mxu2 }
 0x2f9   : > { %v1321_v63 = vpop.f32.mrf.mxu3  ;;  %v1302_v36 = vadd.f32 %v1301_v62, %v1238_v27 }
 0x2fa   : > { %v1322_v37 = vadd.f32 %v1321_v63, %v1238_v27 }
 0x2fb   : > { %1326 = vst [vmem:[%s338_s24 + $0x10] sm:$0xff] %v1302_v36 }
 0x2fc   : > { %1327 = vst [vmem:[%s338_s24 + $0x18] sm:$0xff] %v1322_v37 }
 0x2fd   : > { %1619 = shalt.err (!%p1616_p3)
}
 0x2fe   : > { %1549 = dma.vmem_to_hbm [thread:$0]  (%p1745_p5), %s1343_s29, 512, %s1345_s14, %s1329_s16  }
 0x2ff PF: > { %p1555_p4 = scmp.ge.s32.totalorder %s1654_s12, 2  ;;  %s1356_s22 = sand.u32 1, %s1642_s30  }
 0x300   : > { %s1357_s24 = scalar_lea.sflag [#allocation3], %s1356_s22 }
 0x301   : > { %p1552_p7 = pnand %p1555_p4, %p1749_p6 }
 0x303   : > { %p1553_p8 = pneg %p1552_p7 }
 0x305   : > { %1637 = dma.done.wait (%p1553_p8), %s1357_s24, 512  }
 0x306   : > { %1639 = vsyncadd (%p1553_p8), %s1357_s24, 4294966784  ;;  %p19_p9 = scmp.ge.s32.totalorder %s1732_s15, 4   ;;  %s2163_s30 = smov %s1646_s10 }
 0x307   : > { %s2164_s10 = smov %s1650_s11  ;;  %s2165_s11 = smov %s1743_s18 }
 0x308   : > { %s2166_s12 = smov %s1732_s15  ;;  %21 = sbr.rel (!%p19_p9) target bundleno = 3 (0x3), region = 91 }
 0x30d   :  { %1363 = vsyncpa [#allocation3], 1 }
 0x30e   :  { %1365 = vsyncpa [#allocation3 + $0x1], 1 }

</bundles_post_ra>
